<compile_context>
chip_gen: v6e
topology: v6e:2x2x1
jax: 0.10.0
libtpu: 0.0.40
codegen_flags: <defaults>
</compile_context>

<pallas_src>
import jax
import jax.numpy as jnp
from jax.experimental import pallas as pl
from jax.experimental.pallas import tpu as pltpu


def gcn_kernel(a_ref, xw_ref, mask_ref, w2_ref, b1_ref, b2_ref, out_ref):
    """One grid step = G graphs packed block-diagonally (M = G * N_PAD rows).

       h1  = relu(A @ (X W1) + b1)          (X W1 hoisted to the wrapper)
       h2  = relu(A @ (h1 W2) + b2)
       out = mask @ h2                      (mask rows pre-scaled by 1/n_g)
    """
    a = a_ref[0]                                   # (M, M) bf16, block-diagonal

    # ----- GraphConv layer 1 -----
    h1 = jnp.dot(a, xw_ref[0], preferred_element_type=jnp.float32)
    h1 = jnp.maximum(h1 + b1_ref[...], 0.0)

    # ----- GraphConv layer 2 -----
    hw = jnp.dot(h1.astype(jnp.bfloat16), w2_ref[...],
                 preferred_element_type=jnp.float32)
    h2 = jnp.dot(a, hw.astype(jnp.bfloat16), preferred_element_type=jnp.float32)
    h2 = jnp.maximum(h2 + b2_ref[...], 0.0)

    # ----- dgl.mean_nodes as one MXU matvec per graph -----
    out_ref[0] = jnp.dot(mask_ref[0], h2.astype(jnp.bfloat16),
                         preferred_element_type=jnp.float32)


def gcn_forward(a_norm, x, w1, b1, w2, b2, node_counts,
                *, graphs_per_step=8, hidden_pad=128):
    """Batched GCN forward. a_norm: (B, N_PAD, N_PAD) f32 normalized adjacency
       (zero-padded per graph), x: (B, N_PAD, IN_DIM) f32 node features.
       Returns (B, hidden) == dgl.mean_nodes output per graph."""
    B, n_pad, _ = a_norm.shape
    in_dim = x.shape[-1]
    hidden = w1.shape[1]
    h_pad = max(hidden_pad, hidden)
    G = graphs_per_step
    assert B % G == 0, "batch must be divisible by graphs_per_step"
    num_steps = B // G
    M = G * n_pad                                  # packed node rows per step

    # Zero-pad hidden axis to lane-dense 128. Padded columns stay exactly zero
    # through (zero bias + ReLU) in both layers and are sliced off at the end.
    w1p = jnp.zeros((in_dim, h_pad), jnp.float32).at[:, :hidden].set(w1)
    b1p = jnp.zeros((1, h_pad), jnp.float32).at[:, :hidden].set(b1.reshape(1, -1))
    w2p = jnp.zeros((h_pad, h_pad), jnp.float32).at[:hidden, :hidden].set(w2)
    b2p = jnp.zeros((1, h_pad), jnp.float32).at[:, :hidden].set(b2.reshape(1, -1))
    w2_bf16 = w2p.astype(jnp.bfloat16)

    # Hoisted shared projection: one big (B*N, IN_DIM) @ (IN_DIM, 128) matmul
    # in f32 (outside the kernel), then cast to bf16 for the A-matmul.
    xw = (x.reshape(B * n_pad, in_dim) @ w1p).astype(jnp.bfloat16)
    xw = xw.reshape(num_steps, M, h_pad)

    # Block-diagonal packed adjacency per step (bf16, lane-dense M=128 wide).
    eye_g = jnp.eye(G, dtype=jnp.float32)
    a_blk = jnp.einsum('sgij,gh->sgihj',
                       a_norm.reshape(num_steps, G, n_pad, n_pad), eye_g)
    a_blk = a_blk.reshape(num_steps, M, M).astype(jnp.bfloat16)

    # Readout mask: mask[s, g, g*n_pad + i] = 1/n_g if i < n_g else 0.
    valid = jnp.arange(n_pad)[None, :] < node_counts[:, None]       # (B, N_PAD)
    inv_n = 1.0 / jnp.maximum(node_counts, 1).astype(jnp.float32)   # guard n==0
    mask_rows = valid.astype(jnp.float32) * inv_n[:, None]          # (B, N_PAD)
    mask = jnp.einsum('sgi,gh->sghi',
                      mask_rows.reshape(num_steps, G, n_pad), eye_g)
    mask = mask.reshape(num_steps, G, M).astype(jnp.bfloat16)

    flops_per_step = (2 * M * M * h_pad            # A @ XW
                      + 2 * M * h_pad * h_pad      # h1 @ W2
                      + 2 * M * M * h_pad          # A @ (h1 W2)
                      + 2 * G * M * h_pad)         # mask @ h2
    bytes_accessed = (num_steps * (M * M * 2 + M * h_pad * 2 + G * M * 2
                                   + G * h_pad * 4)
                      + h_pad * h_pad * 2 + 2 * h_pad * 4)
    cost = pl.CostEstimate(flops=num_steps * flops_per_step,
                           transcendentals=0,
                           bytes_accessed=bytes_accessed)

    grid_spec = pltpu.PrefetchScalarGridSpec(
        num_scalar_prefetch=0,
        grid=(num_steps,),
        in_specs=[
            pl.BlockSpec((1, M, M), lambda s: (s, 0, 0)),       # A (bf16)
            pl.BlockSpec((1, M, h_pad), lambda s: (s, 0, 0)),   # X @ W1 (bf16)
            pl.BlockSpec((1, G, M), lambda s: (s, 0, 0)),       # readout mask
            pl.BlockSpec((h_pad, h_pad), lambda s: (0, 0)),     # W2 (bf16)
            pl.BlockSpec((1, h_pad), lambda s: (0, 0)),         # b1
            pl.BlockSpec((1, h_pad), lambda s: (0, 0)),         # b2
        ],
        out_specs=pl.BlockSpec((1, G, h_pad), lambda s: (s, 0, 0)),
    )

    out = pl.pallas_call(
        gcn_kernel,
        out_shape=jax.ShapeDtypeStruct((num_steps, G, h_pad), jnp.float32),
        grid_spec=grid_spec,
        compiler_params=pltpu.CompilerParams(
            dimension_semantics=("parallel",)),    # steps shard over v7x's 2 TCs
        cost_estimate=cost,
    )(a_blk, xw, mask, w2_bf16, b1p, b2p)

    return out.reshape(B, h_pad)[:, :hidden]


def build_normalized_adjacency(key, n, n_pad, p=0.35):
    """Random symmetric graph with self-loops, D^{-1/2} A D^{-1/2}, zero-padded."""
    rand = jax.random.uniform(key, (n, n))
    adj = (rand < p).astype(jnp.float32)
    adj = jnp.maximum(adj, adj.T)                          # symmetrize
    adj = jnp.maximum(adj, jnp.eye(n, dtype=jnp.float32))  # self-loops
    deg = jnp.sum(adj, axis=1)
    d_inv_sqrt = 1.0 / jnp.sqrt(jnp.clip(deg, 1.0, None))
    a = d_inv_sqrt[:, None] * adj * d_inv_sqrt[None, :]
    return jnp.zeros((n_pad, n_pad), jnp.float32).at[:n, :n].set(a)


if __name__ == "__main__":
    B, N_PAD, IN_DIM, HIDDEN, G = 16, 16, 8, 32, 8     # 2 grid steps, M = 128

    key = jax.random.PRNGKey(0)
    k_n, k_adj, k_x, k_w1, k_b1, k_w2, k_b2 = jax.random.split(key, 7)

    node_counts = jax.random.randint(k_n, (B,), 5, N_PAD + 1).astype(jnp.int32)

    adj_keys = jax.random.split(k_adj, B)
    a_f32 = jnp.stack([
        build_normalized_adjacency(adj_keys[i], int(node_counts[i]), N_PAD)
        for i in range(B)
    ])

    x = jax.random.normal(k_x, (B, N_PAD, IN_DIM), dtype=jnp.float32)

    def glorot(k, shape):
        limit = jnp.sqrt(6.0 / (shape[0] + shape[1]))
        return jax.random.uniform(k, shape, jnp.float32, -limit, limit)

    w1 = glorot(k_w1, (IN_DIM, HIDDEN))
    b1 = 0.1 * jax.random.normal(k_b1, (HIDDEN,), dtype=jnp.float32)
    w2 = glorot(k_w2, (HIDDEN, HIDDEN))
    b2 = 0.1 * jax.random.normal(k_b2, (HIDDEN,), dtype=jnp.float32)

    hg = gcn_forward(a_f32, x, w1, b1, w2, b2, node_counts, graphs_per_step=G)
    hg = jax.block_until_ready(hg)
    assert hg.shape == (B, HIDDEN)

    # Pure-JAX f32 per-graph reference (kernel uses bf16 MXU operands -> loosened tol).
    refs = []
    for i in range(B):
        n = int(node_counts[i])
        a_g = a_f32[i, :n, :n]
        x_g = x[i, :n, :]
        h1_r = jnp.maximum(a_g @ (x_g @ w1) + b1[None, :], 0.0)
        h2_r = jnp.maximum(a_g @ (h1_r @ w2) + b2[None, :], 0.0)
        refs.append(jnp.mean(h2_r, axis=0))
    hg_ref = jnp.stack(refs)

    err = jnp.max(jnp.abs(hg - hg_ref))
    assert jnp.allclose(hg, hg_ref, atol=5e-2, rtol=5e-2), \
        f"mismatch, max abs err {err}"

    print("KERNEL_OK")
</pallas_src>

<mosaic_0001>
module attributes {stable_mosaic.version = 11 : i64} {
  func.func @gcn_kernel(%arg0: i32, %arg1: memref<1x128x128xbf16, #tpu.memory_space<vmem>>, %arg2: memref<1x128x128xbf16, #tpu.memory_space<vmem>>, %arg3: memref<1x8x128xbf16, #tpu.memory_space<vmem>>, %arg4: memref<128x128xbf16, #tpu.memory_space<vmem>>, %arg5: memref<1x128xf32, #tpu.memory_space<vmem>>, %arg6: memref<1x128xf32, #tpu.memory_space<vmem>>, %arg7: memref<1x8x128xf32, #tpu.memory_space<vmem>>) attributes {dimension_semantics = [#tpu.dimension_semantics<parallel>], iteration_bounds = array<i64: 2>, scalar_prefetch = 0 : i64, scratch_operands = 0 : i64, tpu.core_type = #tpu.core_type<tc>, window_params = [{transform_indices = @transform_0, window_bounds = array<i64: 1, 128, 128>}, {transform_indices = @transform_1, window_bounds = array<i64: 1, 128, 128>}, {transform_indices = @transform_2, window_bounds = array<i64: 1, 8, 128>}, {pipeline_mode = #tpu.pipeline_mode<synchronous>, transform_indices = @transform_3, window_bounds = array<i64: 128, 128>}, {pipeline_mode = #tpu.pipeline_mode<synchronous>, transform_indices = @transform_4, window_bounds = array<i64: 1, 128>}, {pipeline_mode = #tpu.pipeline_mode<synchronous>, transform_indices = @transform_5, window_bounds = array<i64: 1, 128>}, {transform_indices = @transform_6, window_bounds = array<i64: 1, 8, 128>}]} {
    %c0 = arith.constant 0 : index
    %c0_0 = arith.constant 0 : index
    %c0_1 = arith.constant 0 : index
    %0 = vector.load %arg1[%c0, %c0_0, %c0_1] : memref<1x128x128xbf16, #tpu.memory_space<vmem>>, vector<1x128x128xbf16>
    %1 = vector.shape_cast %0 : vector<1x128x128xbf16> to vector<128x128xbf16>
    %c0_2 = arith.constant 0 : index
    %c0_3 = arith.constant 0 : index
    %c0_4 = arith.constant 0 : index
    %2 = vector.load %arg2[%c0_2, %c0_3, %c0_4] : memref<1x128x128xbf16, #tpu.memory_space<vmem>>, vector<1x128x128xbf16>
    %3 = vector.shape_cast %2 : vector<1x128x128xbf16> to vector<128x128xbf16>
    %cst = arith.constant dense<0.000000e+00> : vector<128x128xf32>
    %4 = tpu.matmul %1, %3, %cst {dimension_numbers = #tpu.dot_dimension_numbers<[1], [0], [0], [1], [0, 0, 1, 1], [], []>} : vector<128x128xbf16>, vector<128x128xbf16>, vector<128x128xf32> -> vector<128x128xf32>
    %c0_5 = arith.constant 0 : index
    %c0_6 = arith.constant 0 : index
    %5 = vector.load %arg5[%c0_5, %c0_6] : memref<1x128xf32, #tpu.memory_space<vmem>>, vector<1x128xf32>
    %6 = vector.broadcast %5 : vector<1x128xf32> to vector<128x128xf32>
    %7 = arith.addf %4, %6 : vector<128x128xf32>
    %cst_7 = arith.constant 0.000000e+00 : f32
    %8 = vector.broadcast %cst_7 : f32 to vector<128x128xf32>
    %9 = arith.maximumf %7, %8 : vector<128x128xf32>
    %10 = arith.truncf %9 : vector<128x128xf32> to vector<128x128xbf16>
    %c0_8 = arith.constant 0 : index
    %c0_9 = arith.constant 0 : index
    %11 = vector.load %arg4[%c0_8, %c0_9] : memref<128x128xbf16, #tpu.memory_space<vmem>>, vector<128x128xbf16>
    %cst_10 = arith.constant dense<0.000000e+00> : vector<128x128xf32>
    %12 = tpu.matmul %10, %11, %cst_10 {dimension_numbers = #tpu.dot_dimension_numbers<[1], [0], [0], [1], [0, 0, 1, 1], [], []>} : vector<128x128xbf16>, vector<128x128xbf16>, vector<128x128xf32> -> vector<128x128xf32>
    %13 = arith.truncf %12 : vector<128x128xf32> to vector<128x128xbf16>
    %cst_11 = arith.constant dense<0.000000e+00> : vector<128x128xf32>
    %14 = tpu.matmul %1, %13, %cst_11 {dimension_numbers = #tpu.dot_dimension_numbers<[1], [0], [0], [1], [0, 0, 1, 1], [], []>} : vector<128x128xbf16>, vector<128x128xbf16>, vector<128x128xf32> -> vector<128x128xf32>
    %c0_12 = arith.constant 0 : index
    %c0_13 = arith.constant 0 : index
    %15 = vector.load %arg6[%c0_12, %c0_13] : memref<1x128xf32, #tpu.memory_space<vmem>>, vector<1x128xf32>
    %16 = vector.broadcast %15 : vector<1x128xf32> to vector<128x128xf32>
    %17 = arith.addf %14, %16 : vector<128x128xf32>
    %cst_14 = arith.constant 0.000000e+00 : f32
    %18 = vector.broadcast %cst_14 : f32 to vector<128x128xf32>
    %19 = arith.maximumf %17, %18 : vector<128x128xf32>
    %c0_15 = arith.constant 0 : index
    %c0_16 = arith.constant 0 : index
    %c0_17 = arith.constant 0 : index
    %20 = vector.load %arg3[%c0_15, %c0_16, %c0_17] : memref<1x8x128xbf16, #tpu.memory_space<vmem>>, vector<1x8x128xbf16>
    %21 = vector.shape_cast %20 : vector<1x8x128xbf16> to vector<8x128xbf16>
    %22 = arith.truncf %19 : vector<128x128xf32> to vector<128x128xbf16>
    %cst_18 = arith.constant dense<0.000000e+00> : vector<8x128xf32>
    %23 = tpu.matmul %21, %22, %cst_18 {dimension_numbers = #tpu.dot_dimension_numbers<[1], [0], [0], [1], [0, 0, 1, 1], [], []>} : vector<8x128xbf16>, vector<128x128xbf16>, vector<8x128xf32> -> vector<8x128xf32>
    %c0_19 = arith.constant 0 : index
    %c0_20 = arith.constant 0 : index
    %c0_21 = arith.constant 0 : index
    %24 = vector.load %arg7[%c0_19, %c0_20, %c0_21] : memref<1x8x128xf32, #tpu.memory_space<vmem>>, vector<1x8x128xf32>
    %25 = vector.shape_cast %24 : vector<1x8x128xf32> to vector<8x128xf32>
    %26 = vector.shape_cast %23 : vector<8x128xf32> to vector<1x8x128xf32>
    tpu.vector_store %arg7[%c0_19, %c0_20, %c0_21], %26 {strides = array<i32>} : memref<1x8x128xf32, #tpu.memory_space<vmem>>, vector<1x8x128xf32>,
    return
  }
  func.func @transform_0(%arg0: i32) -> (i32, i32, i32) {
    %c0_i32 = arith.constant 0 : i32
    %c0_i32_0 = arith.constant 0 : i32
    %c0_i32_1 = arith.constant 0 : i32
    return %arg0, %c0_i32, %c0_i32_0 : i32, i32, i32
  }
  func.func @transform_1(%arg0: i32) -> (i32, i32, i32) {
    %c0_i32 = arith.constant 0 : i32
    %c0_i32_0 = arith.constant 0 : i32
    %c0_i32_1 = arith.constant 0 : i32
    return %arg0, %c0_i32, %c0_i32_0 : i32, i32, i32
  }
  func.func @transform_2(%arg0: i32) -> (i32, i32, i32) {
    %c0_i32 = arith.constant 0 : i32
    %c0_i32_0 = arith.constant 0 : i32
    %c0_i32_1 = arith.constant 0 : i32
    return %arg0, %c0_i32, %c0_i32_0 : i32, i32, i32
  }
  func.func @transform_3(%arg0: i32) -> (i32, i32) {
    %c0_i32 = arith.constant 0 : i32
    %c0_i32_0 = arith.constant 0 : i32
    %c0_i32_1 = arith.constant 0 : i32
    return %c0_i32, %c0_i32_0 : i32, i32
  }
  func.func @transform_4(%arg0: i32) -> (i32, i32) {
    %c0_i32 = arith.constant 0 : i32
    %c0_i32_0 = arith.constant 0 : i32
    %c0_i32_1 = arith.constant 0 : i32
    return %c0_i32, %c0_i32_0 : i32, i32
  }
  func.func @transform_5(%arg0: i32) -> (i32, i32) {
    %c0_i32 = arith.constant 0 : i32
    %c0_i32_0 = arith.constant 0 : i32
    %c0_i32_1 = arith.constant 0 : i32
    return %c0_i32, %c0_i32_0 : i32, i32
  }
  func.func @transform_6(%arg0: i32) -> (i32, i32, i32) {
    %c0_i32 = arith.constant 0 : i32
    %c0_i32_0 = arith.constant 0 : i32
    %c0_i32_1 = arith.constant 0 : i32
    return %arg0, %c0_i32, %c0_i32_0 : i32, i32, i32
  }
}

</mosaic_0001>

<bundles_post_ra>
// kernel: tpu_custom_call.1
= control target key start
LH: loop header
LB: loop body
LE: loop exit
PB: predicated region body
PF: predicated region fallthrough
CT: control target
= control target key end

     0   :  { %s1974_s0 = inlined_call_operand.hbm [shape: bf16[2,128,128], index: 0, kind: input, shape index: {}]   ;;  %s1975_s1 = inlined_call_operand.hbm [shape: bf16[2,128,128], index: 1, kind: input, shape index: {}]   ;;  %s1976_s2 = inlined_call_operand.hbm [shape: bf16[2,8,128], index: 2, kind: input, shape index: {}]   ;;  %s1977_s3 = inlined_call_operand.hbm [shape: bf16[128,128], index: 3, kind: input, shape index: {}]   ;;  %s1978_s4 = inlined_call_operand.vmem [shape: f32[1,128], index: 4, kind: input, shape index: {}]   ;;  %s1979_s5 = inlined_call_operand.vmem [shape: f32[1,128], index: 5, kind: input, shape index: {}]   ;;  %s1980_s6 = inlined_call_operand.hbm [shape: f32[2,8,128], index: 6, kind: output, shape index: {}]  }
   0x1   :  { %1995 = sst [smem:[#allocation19_spill]] %s1974_s0 }
   0x2   :  { %1996 = sst [smem:[#allocation20_spill]] %s1975_s1 }
   0x3   :  { %11 = vsyncpa [#allocation3], 0 }
   0x4   :  { %13 = vsyncpa [#allocation3 + $0x1], 0 }
   0x5   :  { %14 = vsyncpa [#allocation6], 0 }
   0x6   :  { %16 = vsyncpa [#allocation6 + $0x1], 0 }
   0x7   :  { %17 = vsyncpa [#allocation9], 0 }
   0x8   :  { %18 = vsyncpa [#allocation4], 0 }
   0x9   :  { %20 = vsyncpa [#allocation4 + $0x1], 0  ;;  %s1638_s21 = smov 0   ;;  %s1640_s22 = smov 0  }
   0xa   :  { %s1642_s23 = smov 0   ;;  %s1644_s24 = smov 0  }
   0xb LB: > { %1997 = sst [smem:[#allocation15_spill]] %s1588_s23  ;;  %s1659_s25 = sadd.s32 1, %s1592_s24   ;;  %s1592_s24 = sphi %s1644_s24, %s2023_s24   ;;  %s1588_s23 = sphi %s1642_s23, %s2025_s23   ;;  %s1584_s22 = sphi %s1640_s22, %s2027_s22   ;;  %s1580_s21 = sphi %s1638_s21, %s2026_s21  }
   0xc   : > { %1998 = sst [smem:[#allocation16_spill]] %s1659_s25  ;;  %s33_s26 = sadd.s32 1, %s1588_s23 }
   0xd   : > { %s30_s27 = ssub.s32 %s1592_s24, %s1659_s25  ;;  %p1981_p0 = scmp.ne.s32.totalorder %s1588_s23, %s1584_s22 }
   0xe   : > { %p31_p1 = scmp.eq.s32.totalorder %s30_s27, 0  ;;  %p41_p2 = scmp.eq.s32.totalorder %s1592_s24, 0 }
   0xf   : > { %p1346_p5 = scmp.lt.s32.totalorder %s1592_s24, 2  ;;  %s1676_s29 = sand.u32 1, %s1588_s23  }
  0x10   : > { %s1668_s28 = scalar_select %p31_p1, %s1588_s23, %s33_s26  }
  0x11   : > { %p42_p3 = por %p41_p2, %p1981_p0  ;;  %s1096_s30 = sshll.u32 %s1676_s29, 6 }
  0x12   : > { %1999 = sst [smem:[#allocation17_spill]] %s1668_s28  ;;  %s1140_s7 = sshll.u32 %s1592_s24, 10 }
  0x13   : > { %p1680_p6 = pnand %p1346_p5, %p42_p3  ;;  %s251_s9 = sand.u32 1, %s1592_s24  }
  0x14   : > { %s2001_s1 = sld [smem:[#allocation20_spill]]  ;;  %s255_s13 = scalar_lea.vmem [#allocation5], %s1096_s30 }
  0x15   : > { %s262_s14 = sshll.u32 %s255_s13, 4  ;;  %s1696_s15 = scalar_lea.sflag [#allocation6], %s251_s9  ;;  %s1694_s14 = int_to_ptr.vmem [resolvable:$true] %s262_s14 }
  0x16   : > { %p1702_p8 = pneg %p1680_p6 }
  0x1a   : > { %s1690_s12 = scalar_lea.hbm %s2001_s1, %s1140_s7  ;;  %s1415_s20 = scalar_lea.hbm %s2001_s1, 2048 }
  0x1b   : > { %s1410_s16 = scalar_lea.hbm %s1690_s12, 1024  ;;  %p1416_p11 = scmp.lt.s32.totalorder %s1690_s12, %s2001_s1 }
  0x1c   : > { %p1411_p7 = scmp.ne.s32.totalorder %s1690_s12, %s1410_s16  ;;  %p1417_p12 = scmp.lt.s32.totalorder %s1415_s20, %s1410_s16 }
  0x1e   : > { %p1413_p9 = pnand %p1702_p8, %p1411_p7  ;;  %p1418_p13 = por %p1417_p12, %p1416_p11 }
  0x20   : > { %p1414_p10 = pneg %p1413_p9 }
  0x22   : > { %p1419_p1 = pnand %p1418_p13, %p1414_p10 }
  0x24   : > { %1422 = shalt.err (!%p1419_p1)
}
  0x25   : > { %s1423_s9 = scalar_lea.vmem %s1694_s14, 1024  ;;  %s1594_s10 = smov [#allocation5]  }
  0x26   : > { %p1424_p2 = scmp.ne.s32.totalorder %s1694_s14, %s1423_s9  ;;  %s1428_s11 = sshll.u32 %s1594_s10, 4  ;;  %s1429_s11 = int_to_ptr.vmem [resolvable:$false] %s1428_s11 }
  0x27   : > { %s1430_s13 = scalar_lea.vmem %s1429_s11, 2048  ;;  %p1431_p7 = scmp.lt.s32.totalorder %s1694_s14, %s1429_s11 }
  0x28   : > { %p1426_p3 = pnand %p1424_p2, %p1702_p8  ;;  %p1432_p9 = scmp.lt.s32.totalorder %s1430_s13, %s1423_s9 }
  0x2a   : > { %p1427_p5 = pneg %p1426_p3  ;;  %p1433_p4 = por %p1432_p9, %p1431_p7 }
  0x2c   : > { %p1434_p0 = pnand %p1433_p4, %p1427_p5 }
  0x2e   : > { %1437 = shalt.err (!%p1434_p0)
}
  0x2f   : > { %s1982_s16 = smov 64   ;;  %s1984_s18 = smov 4  }
  0x30   : > { %1337 = dma.hbm_to_vmem [thread:$0]  (!%p1680_p6), %s1690_s12, 1024, %s1694_s14, %s1696_s15, %s1982_s16, %s1982_s16, %s1984_s18  }
  0x31   : > { %s1729_s19 = sadd.s32 4294967295, %s1592_s24   ;;  %s1092_s20 = sadd.s32 4294967294, %s1592_s24  }
  0x32   : > { %p46_p0 = scmp.ne.s32.totalorder %s1584_s22, %s1580_s21  ;;  %p1987_p4 = scmp.eq.s32.totalorder %s1729_s19, 0 }
  0x33   : > { %p185_p10 = scmp.eq.s32.totalorder %s1729_s19, 1  ;;  %p191_p11 = scmp.eq.s32.totalorder %s1092_s20, 1 }
  0x34   : > { %p1738_p12 = por %p1987_p4, %p46_p0  ;;  %p1093_p13 = scmp.ge.s32.totalorder %s1592_s24, 1 }
  0x35   : > { %p2004_p1 = scmp.ne.s32.totalorder %s1588_s23, %s1584_s22  ;;  %p1750_p3 = por %p191_p11, %p46_p0 }
  0x36   : > { %s2003_s26 = scalar_select %p1738_p12, 1, 0 }
  0x37   : > { %p1746_p2 = por %p185_p10, %p2004_p1  ;;  %p198_p5 = scmp.lt.s32.totalorder %s1592_s24, 3 }
  0x38   : > { %s2006_s14 = scalar_select %p1750_p3, 1, 0 }
  0x39   : > { %s2005_s12 = scalar_select %p1746_p2, 1, 0 }
  0x3a   : > { %2007 = sst [smem:[#allocation18_spill]] %s2006_s14  ;;  %p1755_p7 = pnand %p1093_p13, %p198_p5 }
  0x3b   : > { %s1597_s9 = smov [#allocation8]   ;;  %s2009_s0 = sld [smem:[#allocation19_spill]] }
  0x3c   : > { %s2008_s27 = scalar_select %p1755_p7, 1, 0 }
  0x3d   : > { %s210_s10 = sshll.u32 %s1597_s9, 4  ;;  %p1327_p9 = pneg %p1755_p7  ;;  %s1759_s10 = int_to_ptr.vmem [resolvable:$true] %s210_s10 }
  0x3e   : > { %s234_s16 = scalar_lea.vmem [#allocation2], %s1096_s30  ;;  %s231_s28 = scalar_lea.sflag [#allocation3], %s1676_s29 }
  0x3f   : > { %s241_s18 = sshll.u32 %s234_s16, 4  ;;  %p1775_p0 = pnand %p1327_p9, %p1987_p4  ;;  %s1779_s18 = int_to_ptr.vmem [resolvable:$true] %s241_s18 }
  0x41   : > { %s1768_s20 = scalar_lea.hbm %s2009_s0, %s1140_s7  ;;  %s1443_s13 = scalar_lea.hbm %s2009_s0, 2048 }
  0x42   : > { %s2010_s9 = scalar_select %p1775_p0, 1, 0 }
  0x43   : > { %s1438_s23 = scalar_lea.hbm %s1768_s20, 1024  ;;  %p1444_p1 = scmp.lt.s32.totalorder %s1768_s20, %s2009_s0 }
  0x44   : > { %p1439_p10 = scmp.ne.s32.totalorder %s1768_s20, %s1438_s23  ;;  %p1445_p5 = scmp.lt.s32.totalorder %s1443_s13, %s1438_s23 }
  0x46   : > { %p1441_p11 = pnand %p1439_p10, %p1702_p8  ;;  %p1446_p9 = por %p1445_p5, %p1444_p1 }
  0x48   : > { %p1442_p13 = pneg %p1441_p11 }
  0x4a   : > { %p1447_p4 = pnand %p1446_p9, %p1442_p13 }
  0x4c   : > { %1450 = shalt.err (!%p1447_p4)
}
  0x4d   : > { %s1451_s1 = scalar_lea.vmem %s1779_s18, 1024  ;;  %s1598_s25 = smov [#allocation2]  }
  0x4e   : > { %p1452_p3 = scmp.ne.s32.totalorder %s1779_s18, %s1451_s1  ;;  %s1456_s7 = sshll.u32 %s1598_s25, 4  ;;  %s1457_s7 = int_to_ptr.vmem [resolvable:$false] %s1456_s7 }
  0x4f   : > { %s1458_s11 = scalar_lea.vmem %s1457_s7, 2048  ;;  %p1459_p2 = scmp.lt.s32.totalorder %s1779_s18, %s1457_s7 }
  0x50   : > { %p1454_p10 = pnand %p1452_p3, %p1702_p8  ;;  %p1460_p12 = scmp.lt.s32.totalorder %s1458_s11, %s1451_s1 }
  0x52   : > { %p1455_p11 = pneg %p1454_p10  ;;  %p1461_p7 = por %p1460_p12, %p1459_p2 }
  0x54   : > { %p1462_p0 = pnand %p1461_p7, %p1455_p11 }
  0x56   : > { %1465 = shalt.err (!%p1462_p0)
}
  0x57   : > { %s2011_s23 = smov 4   ;;  %s2012_s13 = smov 64  }
  0x58   : > { %1334 = dma.hbm_to_vmem [thread:$0]  (!%p1680_p6), %s1768_s20, 1024, %s1779_s18, %s231_s28, %s2012_s13, %s2012_s13, %s2011_s23  }
  0x59   : > { %p2013_p4 = scmp.ne.s32.totalorder %s2010_s9, 0  ;;  %s1477_s25 = scalar_lea.vmem %s1759_s10, 1024 }
  0x5a   : > { %p1478_p13 = scmp.ne.s32.totalorder %s1759_s10, %s1477_s25  ;;  %p1485_p2 = scmp.lt.s32.totalorder %s1759_s10, %s1759_s10 }
  0x5b   : > { %p1468_p3 = pneg %p2013_p4  ;;  %p1486_p7 = scmp.lt.s32.totalorder %s1477_s25, %s1477_s25 }
  0x5d   : > { %p1480_p1 = pnand %p1478_p13, %p1468_p3  ;;  %p1487_p0 = por %p1486_p7, %p1485_p2 }
  0x5f   : > { %p1481_p12 = pneg %p1480_p1 }
  0x61   : > { %p1488_p5 = pnand %p1487_p0, %p1481_p12 }
  0x63   : > { %1491 = shalt.err (!%p1488_p5)
}
  0x64   : > { %1330 = dma.hbm_to_vmem [thread:$0]  (!%p2013_p4), %s1977_s3, 1024, %s1759_s10, [#allocation9], %s2012_s13, %s2012_s13, %s2011_s23  }
  0x65   : > { %s1103_s18 = sshll.u32 %s1592_s24, 6  ;;  %s2014_s20 = sshll.u32 %s1676_s29, 2 }
  0x66   : > { %s276_s30 = scalar_lea.vmem [#allocation7], %s2014_s20  ;;  %s281_s25 = scalar_lea.hbm %s1976_s2, %s1103_s18 }
  0x67   : > { %s283_s16 = sshll.u32 %s276_s30, 4  ;;  %s1492_s9 = scalar_lea.hbm %s281_s25, 64  ;;  %s284_s16 = int_to_ptr.vmem [resolvable:$true] %s283_s16 }
  0x68   : > { %p1493_p9 = scmp.ne.s32.totalorder %s281_s25, %s1492_s9  ;;  %s1497_s28 = scalar_lea.hbm %s1976_s2, 128 }
  0x69   : > { %p1498_p4 = scmp.lt.s32.totalorder %s281_s25, %s1976_s2  ;;  %p1499_p3 = scmp.lt.s32.totalorder %s1497_s28, %s1492_s9 }
  0x6a   : > { %p1495_p10 = pnand %p1493_p9, %p1702_p8 }
  0x6b   : > { %p1500_p13 = por %p1499_p3, %p1498_p4 }
  0x6c   : > { %p1496_p11 = pneg %p1495_p10 }
  0x6e   : > { %p1501_p1 = pnand %p1500_p13, %p1496_p11 }
  0x70   : > { %1504 = shalt.err (!%p1501_p1)
}
  0x71   : > { %s1505_s29 = scalar_lea.vmem %s284_s16, 64  ;;  %s1599_s23 = smov [#allocation7]  }
  0x72   : > { %p1506_p12 = scmp.ne.s32.totalorder %s284_s16, %s1505_s29  ;;  %s1510_s13 = sshll.u32 %s1599_s23, 4  ;;  %s1511_s13 = int_to_ptr.vmem [resolvable:$false] %s1510_s13 }
  0x73   : > { %s1512_s18 = scalar_lea.vmem %s1511_s13, 128  ;;  %p1513_p0 = scmp.lt.s32.totalorder %s284_s16, %s1511_s13 }
  0x74   : > { %p1508_p2 = pnand %p1506_p12, %p1702_p8  ;;  %p1514_p5 = scmp.lt.s32.totalorder %s1512_s18, %s1505_s29 }
  0x76   : > { %p1509_p7 = pneg %p1508_p2  ;;  %p1515_p9 = por %p1514_p5, %p1513_p0 }
  0x78   : > { %p1516_p10 = pnand %p1515_p9, %p1509_p7 }
  0x7a   : > { %1519 = shalt.err (!%p1516_p10)
}
  0x7b   : > { %1340 = dma.hbm_to_vmem [thread:$0]  (!%p1680_p6), %s281_s25, 64, %s284_s16, %s1696_s15  }
  0x7c   : > { %p2015_p11 = scmp.ne.s32.totalorder %s2008_s27, 0 }
  0x7d   : > { %s1842_s0 = sand.u32 (!%p2015_p11), 1, %s1584_s22   ;;  %p2016_p8 = scmp.ne.s32.totalorder (!%p2015_p11), %s2003_s26, 0 }
  0x7e   : > { %292 = sbr.rel (%p2015_p11) target bundleno = 1099 (0x44b), region = 44  ;;  %s1105_s17 = sshll.u32 (!%p2015_p11), %s1842_s0, 6 }
  0x7f   : > { %s295_s14 = scalar_lea.sflag (!%p2015_p11), [#allocation3], %s1842_s0  ;;  %s1846_s20 = scalar_lea.vmem (!%p2015_p11), [#allocation2], %s1105_s17 }
  0x83   : > { %1563 = dma.done.wait (%p2016_p8), %s295_s14, 1024  }
  0x84   : > { %1565 = vsyncadd (%p2016_p8), %s295_s14, 4294966272  ;;  %s303_s8 = sand.u32 1, %s1729_s19   ;;  %s1853_s27 = scalar_lea.vmem [#allocation5], %s1105_s17 }
  0x85   : > { %s304_s15 = scalar_lea.sflag [#allocation6], %s303_s8 }
  0x86   : > { %1567 = dma.done.wait (%p2016_p8), %s304_s15, 1088  }
  0x87   : > { %1569 = vsyncadd (%p2016_p8), %s304_s15, 4294966208  ;;  %s1107_s30 = sshll.u32 %s1842_s0, 2  ;;  %p2017_p6 = scmp.eq.s32.totalorder %s1729_s19, 0 }
  0x88   : > { %s1860_s16 = scalar_lea.vmem [#allocation7], %s1107_s30 }
  0x89   : > { %1571 = dma.done.wait (%p2017_p6), [#allocation9], 1024   ;;  %p2018_p4 = pmov %p2017_p6 }
  0x8a   : > { %v1386_v0 = vld [vmem:[%s1853_s27 + $0x38] sm:$0xff]   ;;  %v1387_v1 = vld [vmem:[%s1853_s27 + $0x30] sm:$0xff]   ;;  %v1388_v2 = vld [vmem:[%s1853_s27 + $0x28] sm:$0xff]   ;;  %vm1601_vm0 = vmmov 0   ;;  %s1109_s9 = sshll.u32 %s1842_s0, 3  ;;  %s1137_s10 = sshll.u32 %s1729_s19, 7 }
  0x8b   : > { %1573 = vsyncadd (%p2018_p4), [#allocation9], 4294966272  ;;  %1199 = vmatprep.subr.bf16.mxu0 %v1386_v0  ;;  %v1389_v3 = vld [vmem:[%s1853_s27 + $0x20] sm:$0xff]   ;;  %v1390_v5 = vld [vmem:[%s1853_s27 + $0x18] sm:$0xff]   ;;  %s358_s1 = scalar_lea.vmem [#allocation10], %s1109_s9  ;;  %s1933_s13 = scalar_lea.hbm %s1980_s6, %s1137_s10 }
  0x8c   : > { %1200 = vmatpush3.bf16.msra.mxu0 %v1386_v0  ;;  %v1394_v4 = vld [vmem:[%s1846_s20] sm:$0xff]   ;;  %v1391_v6 = vld [vmem:[%s1853_s27 + $0x10] sm:$0xff]   ;;  %v1403_v8 = vld [vmem:[#allocation8 + $0x30] sm:$0xff]   ;;  %s969_s28 = sshll.u32 %s358_s1, 4  ;;  %s956_s18 = scalar_lea.sflag [#allocation4], %s1842_s0  ;;  %s1928_s28 = int_to_ptr.vmem [resolvable:$true] %s969_s28 }
  0x8d   : > { %1201 = vmatprep.subr.bf16.mxu0 %v1387_v1  ;;  %1215 = vmatprep.mubr.bf16.mxu0 %v1394_v4  ;;  %v1402_v7 = vld [vmem:[#allocation8 + $0x38] sm:$0xff]   ;;  %v1392_v9 = vld [vmem:[%s1853_s27 + $0x8] sm:$0xff]   ;;  %v1404_v10 = vld [vmem:[#allocation8 + $0x28] sm:$0xff]   ;;  %s1520_s17 = scalar_lea.vmem %s1928_s28, 128  ;;  %p2019_p13 = scmp.ne.s32.totalorder %s2005_s12, 0 }
  0x8e   : > { %1231 = vmatprep.subr.bf16.mxu1 %v1402_v7  ;;  %v1393_v11 = vld [vmem:[%s1853_s27] sm:$0xff]   ;;  %v1405_v12 = vld [vmem:[#allocation8 + $0x20] sm:$0xff]   ;;  %v1879_v15 = vld [vmem:[%s1846_s20 + $0x10] sm:$0xff]   ;;  %p1521_p3 = scmp.ne.s32.totalorder %s1928_s28, %s1520_s17  ;;  %s1602_s19 = smov [#allocation10]  }
  0x8f   : > { %1232 = vmatpush3.bf16.msra.mxu1 %v1402_v7  ;;  %v1406_v13 = vld [vmem:[#allocation8 + $0x18] sm:$0xff]   ;;  %v1876_v14 = vld [vmem:[%s1846_s20 + $0x8] sm:$0xff]   ;;  %v1884_v16 = vld [vmem:[%s1846_s20 + $0x18] sm:$0xff]   ;;  %s1524_s14 = sshll.u32 %s1602_s19, 4  ;;  %s1525_s14 = int_to_ptr.vmem [resolvable:$false] %s1524_s14 }
  0x90   : > { %1202 = vmatpush3.bf16.msra.mxu0 %v1387_v1  ;;  %1233 = vmatprep.subr.bf16.mxu1 %v1403_v8  ;;  %v1887_v17 = vld [vmem:[%s1846_s20 + $0x20] sm:$0xff]   ;;  %v1892_v18 = vld [vmem:[%s1846_s20 + $0x28] sm:$0xff]   ;;  %v1895_v19 = vld [vmem:[%s1846_s20 + $0x30] sm:$0xff]   ;;  %p1522_p1 = pnand %p1521_p3, %p2019_p13  ;;  %p1527_p2 = scmp.lt.s32.totalorder %s1928_s28, %s1525_s14 }
  0x91   : > { %1203 = vmatprep.subr.bf16.mxu0 %v1388_v2  ;;  %v1900_v20 = vld [vmem:[%s1846_s20 + $0x38] sm:$0xff]   ;;  %v1408_v22 = vld [vmem:[#allocation8 + $0x8] sm:$0xff]   ;;  %v1409_v23 = vld [vmem:[#allocation8] sm:$0xff]   ;;  %s1526_s20 = scalar_lea.vmem %s1525_s14, 256 }
  0x92   : > { %v1407_v21 = vld [vmem:[#allocation8 + $0x10] sm:$0xff]   ;;  %v1110_v26 = vld [vmem:[%s1978_s4] ss:$0 sm:$0xff]  ;;  %p1523_p12 = pneg %p1522_p1  ;;  %p1528_p7 = scmp.lt.s32.totalorder %s1526_s20, %s1520_s17 }
  0x93   : > { %1234 = vmatpush3.bf16.msra.mxu1 %v1403_v8 }
  0x94   : > { %1204 = vmatpush3.bf16.msra.mxu0 %v1388_v2  ;;  %1235 = vmatprep.subr.bf16.mxu1 %v1404_v10  ;;  %p1529_p0 = por %p1528_p7, %p1527_p2 }
  0x95   : > { %1205 = vmatprep.subr.bf16.mxu0 %v1389_v3 }
  0x96   : > { %p1530_p5 = pnand %p1529_p0, %p1523_p12 }
  0x97   : > { %1236 = vmatpush3.bf16.msra.mxu1 %v1404_v10 }
  0x98   : > { %1206 = vmatpush3.bf16.msra.mxu0 %v1389_v3  ;;  %1237 = vmatprep.subr.bf16.mxu1 %v1405_v12 }
  0x99   : > { %1207 = vmatprep.subr.bf16.mxu0 %v1390_v5 }
  0x9b   : > { %1238 = vmatpush3.bf16.msra.mxu1 %v1405_v12 }
  0x9c   : > { %1208 = vmatpush3.bf16.msra.mxu0 %v1390_v5  ;;  %1239 = vmatprep.subr.bf16.mxu1 %v1406_v13 }
  0x9d   : > { %1209 = vmatprep.subr.bf16.mxu0 %v1391_v6 }
  0x9f   : > { %1240 = vmatpush3.bf16.msra.mxu1 %v1406_v13 }
  0xa0   : > { %1210 = vmatpush3.bf16.msra.mxu0 %v1391_v6  ;;  %1241 = vmatprep.subr.bf16.mxu1 %v1407_v21 }
  0xa1   : > { %1211 = vmatprep.subr.bf16.mxu0 %v1392_v9 }
  0xa3   : > { %1242 = vmatpush3.bf16.msra.mxu1 %v1407_v21 }
  0xa4   : > { %1212 = vmatpush3.bf16.msra.mxu0 %v1392_v9  ;;  %1243 = vmatprep.subr.bf16.mxu1 %v1408_v22 }
  0xa5   : > { %1213 = vmatprep.subr.bf16.mxu0 %v1393_v11 }
  0xa7   : > { %1244 = vmatpush3.bf16.msra.mxu1 %v1408_v22 }
  0xa8   : > { %1214 = vmatpush3.bf16.msra.mxu0 %v1393_v11  ;;  %1245 = vmatprep.subr.bf16.mxu1 %v1409_v23 }
  0xab   : > { %1216 = vmatmul.mubr.bf16.vlgmr.msra.gmra.mxu0 %v1876_v14  ;;  %1246 = vmatpush3.bf16.msra.mxu1 %v1409_v23 }
  0xac   : > { %1219 = vmatprep.mubr.bf16.mxu0 %v1879_v15 }
  0xb3   : > { %1220 = vmatmul.mubr.bf16.gmra.mxu0 %v1884_v16 }
  0xb4   : > { %1223 = vmatprep.mubr.bf16.mxu0 %v1887_v17 }
  0xbb   : > { %1224 = vmatmul.mubr.bf16.gmra.mxu0 %v1892_v18 }
  0xbc   : > { %1227 = vmatprep.mubr.bf16.mxu0 %v1895_v19 }
  0xc3   : > { %1228 = vmatmul.mubr.bf16.gmra.mxu0 %v1900_v20 }
  0xc4   : > { %1279 = vmatprep.mubr.bf16.mxu0 %v1394_v4 }
 0x16b   : > { %v1217_v24 = vpop.f32.mrf.mxu0 }
 0x16c   : > { %v538_v30 = vadd.f32 %v1217_v24, %v1110_v26 }
 0x16d   : > { %v529_v25 = vpop.f32.mrf.mxu0 }
 0x16e   : > { %v530_v28 = vadd.f32 %v1110_v26, %v529_v25  ;;  %v594_v37 = vmax.f32 %v538_v30, 0.0 }
 0x16f   : > { %v1218_v27 = vpop.f32.mrf.mxu0 }
 0x170   : > { %v541_v29 = vadd.f32 %v1218_v27, %v1110_v26  ;;  %v592_v35 = vmax.f32 %v530_v28, 0.0 }
 0x171   : > { %v532_v31 = vpop.f32.mrf.mxu0 }
 0x172   : > { %v533_v32 = vadd.f32 %v1110_v26, %v532_v31  ;;  %v595_v33 = vmax.f32 %v541_v29, 0.0 }
 0x173   : > { %v1221_v34 = vpop.f32.mrf.mxu0 }
 0x174   : > { %v593_v36 = vmax.f32 %v533_v32, 0.0  ;;  %v609_v40 = vpack.c.bf16 %v595_v33, %v594_v37  ;;  %v554_v44 = vadd.f32 %v1221_v34, %v1110_v26 }
 0x175   : > { %v545_v38 = vpop.f32.mrf.mxu0 }
 0x176   : > { %v608_v39 = vpack.c.bf16 %v593_v36, %v592_v35  ;;  %v546_v42 = vadd.f32 %v1110_v26, %v545_v38  ;;  %v598_v51 = vmax.f32 %v554_v44, 0.0 }
 0x177   : > { %v1222_v41 = vpop.f32.mrf.mxu0 }
 0x178   : > { %v557_v43 = vadd.f32 %v1222_v41, %v1110_v26  ;;  %1247 = vmatprep.mubr.bf16.mxu1 %v608_v39  ;;  %v596_v49 = vmax.f32 %v546_v42, 0.0 }
 0x179   : > { %v548_v45 = vpop.f32.mrf.mxu0  ;;  %1248 = vmatmul.mubr.bf16.vlgmr.msra.gmra.mxu1 %v609_v40 }
 0x17a   : > { %v549_v46 = vadd.f32 %v1110_v26, %v548_v45  ;;  %v599_v47 = vmax.f32 %v557_v43, 0.0 }
 0x17b   : > { %v1225_v48 = vpop.f32.mrf.mxu0 }
 0x17c   : > { %v597_v50 = vmax.f32 %v549_v46, 0.0  ;;  %v611_v54 = vpack.c.bf16 %v599_v47, %v598_v51  ;;  %v570_v58 = vadd.f32 %v1225_v48, %v1110_v26  ;;  %v1600_v48 = vmov 0.0  }
 0x17d   : > { %v561_v52 = vpop.f32.mrf.mxu0  ;;  %1295 = vmatprep.subr.bf16.mxu1 %v1600_v48 }
 0x17e   : > { %v610_v53 = vpack.c.bf16 %v597_v50, %v596_v49  ;;  %v562_v56 = vadd.f32 %v1110_v26, %v561_v52  ;;  %v602_v1 = vmax.f32 %v570_v58, 0.0 }
 0x17f   : > { %v1226_v55 = vpop.f32.mrf.mxu0 }
 0x180   : > { %v573_v57 = vadd.f32 %v1226_v55, %v1110_v26  ;;  %1251 = vmatprep.mubr.bf16.mxu1 %v610_v53  ;;  %v600_v63 = vmax.f32 %v562_v56, 0.0 }
 0x181   : > { %v564_v59 = vpop.f32.mrf.mxu0  ;;  %1252 = vmatmul.mubr.bf16.gmra.mxu1 %v611_v54 }
 0x182   : > { %v565_v60 = vadd.f32 %v1110_v26, %v564_v59  ;;  %v603_v61 = vmax.f32 %v573_v57, 0.0 }
 0x183   : > { %v1229_v62 = vpop.f32.mrf.mxu0 }
 0x184   : > { %v601_v0 = vmax.f32 %v565_v60, 0.0  ;;  %v613_v4 = vpack.c.bf16 %v603_v61, %v602_v1  ;;  %v586_v8 = vadd.f32 %v1229_v62, %v1110_v26 }
 0x185   : > { %v577_v2 = vpop.f32.mrf.mxu0 }
 0x186   : > { %v612_v3 = vpack.c.bf16 %v601_v0, %v600_v63  ;;  %v578_v6 = vadd.f32 %v1110_v26, %v577_v2  ;;  %v606_v21 = vmax.f32 %v586_v8, 0.0 }
 0x187   : > { %v1230_v5 = vpop.f32.mrf.mxu0 }
 0x188   : > { %v589_v7 = vadd.f32 %v1230_v5, %v1110_v26  ;;  %1255 = vmatprep.mubr.bf16.mxu1 %v612_v3  ;;  %v604_v12 = vmax.f32 %v578_v6, 0.0 }
 0x189   : > { %v580_v9 = vpop.f32.mrf.mxu0  ;;  %1256 = vmatmul.mubr.bf16.gmra.mxu1 %v613_v4 }
 0x18a   : > { %v581_v10 = vadd.f32 %v1110_v26, %v580_v9  ;;  %v607_v11 = vmax.f32 %v589_v7, 0.0 }
 0x18c   : > { %v605_v13 = vmax.f32 %v581_v10, 0.0  ;;  %v615_v23 = vpack.c.bf16 %v607_v11, %v606_v21 }
 0x18e   : > { %v614_v22 = vpack.c.bf16 %v605_v13, %v604_v12 }
 0x190   : > { %1259 = vmatprep.mubr.bf16.mxu1 %v614_v22 }
 0x191   : > { %1260 = vmatmul.mubr.bf16.gmra.mxu1 %v615_v23 }
 0x192   : > { %1311 = vmatprep.mubr.msk.bf16.mxu1 %vm1601_vm0, %v1600_v48 }
 0x239   : > { %v1249_v24 = vpop.f32.mrf.mxu1 }
 0x23b   : > { %v714_v25 = vpop.f32.mrf.mxu1 }
 0x23d   : > { %v1250_v27 = vpop.f32.mrf.mxu1 }
 0x23e   : > { %v778_v46 = vpack.c.bf16 %v1250_v27, %v1249_v24 }
 0x23f   : > { %v717_v28 = vpop.f32.mrf.mxu1 }
 0x240   : > { %v777_v47 = vpack.c.bf16 %v717_v28, %v714_v25 }
 0x241   : > { %v1253_v29 = vpop.f32.mrf.mxu1 }
 0x243   : > { %v730_v30 = vpop.f32.mrf.mxu1 }
 0x245   : > { %v1254_v31 = vpop.f32.mrf.mxu1 }
 0x246   : > { %v780_v44 = vpack.c.bf16 %v1254_v31, %v1253_v29 }
 0x247   : > { %v733_v32 = vpop.f32.mrf.mxu1 }
 0x248   : > { %v779_v45 = vpack.c.bf16 %v733_v32, %v730_v30 }
 0x249   : > { %v1257_v33 = vpop.f32.mrf.mxu1 }
 0x24b   : > { %v746_v34 = vpop.f32.mrf.mxu1 }
 0x24d   : > { %v1258_v35 = vpop.f32.mrf.mxu1 }
 0x24e   : > { %v782_v42 = vpack.c.bf16 %v1258_v35, %v1257_v33 }
 0x24f   : > { %v749_v26 = vpop.f32.mrf.mxu1 }
 0x250   : > { %v781_v43 = vpack.c.bf16 %v749_v26, %v746_v34 }
 0x251   : > { %v1261_v36 = vpop.f32.mrf.mxu1 }
 0x253   : > { %v762_v37 = vpop.f32.mrf.mxu1 }
 0x255   : > { %v1262_v38 = vpop.f32.mrf.mxu1 }
 0x256   : > { %v784_v39 = vpack.c.bf16 %v1262_v38, %v1261_v36 }
 0x257   : > { %v765_v40 = vpop.f32.mrf.mxu1 }
 0x258   : > { %v783_v41 = vpack.c.bf16 %v765_v40, %v762_v37  ;;  %1263 = vmatprep.subr.bf16.mxu0 %v784_v39 }
 0x259   : > { %1264 = vmatpush3.bf16.msra.mxu0 %v784_v39 }
 0x25a   : > { %1265 = vmatprep.subr.bf16.mxu0 %v783_v41 }
 0x25d   : > { %1266 = vmatpush3.bf16.msra.mxu0 %v783_v41 }
 0x25e   : > { %1267 = vmatprep.subr.bf16.mxu0 %v782_v42 }
 0x261   : > { %1268 = vmatpush3.bf16.msra.mxu0 %v782_v42  ;;  %v905_v42 = vld [vmem:[%s1860_s16] sm:$0xf] }
 0x262   : > { %1269 = vmatprep.subr.bf16.mxu0 %v781_v43 }
 0x265   : > { %1270 = vmatpush3.bf16.msra.mxu0 %v781_v43 }
 0x266   : > { %1271 = vmatprep.subr.bf16.mxu0 %v780_v44 }
 0x269   : > { %1272 = vmatpush3.bf16.msra.mxu0 %v780_v44 }
 0x26a   : > { %1273 = vmatprep.subr.bf16.mxu0 %v779_v45 }
 0x26d   : > { %1274 = vmatpush3.bf16.msra.mxu0 %v779_v45 }
 0x26e   : > { %1275 = vmatprep.subr.bf16.mxu0 %v778_v46 }
 0x271   : > { %1276 = vmatpush3.bf16.msra.mxu0 %v778_v46 }
 0x272   : > { %1277 = vmatprep.subr.bf16.mxu0 %v777_v47 }
 0x275   : > { %1278 = vmatpush3.bf16.msra.mxu0 %v777_v47 }
 0x278   : > { %1280 = vmatmul.mubr.bf16.vlgmr.msra.gmra.mxu0 %v1876_v14 }
 0x279   : > { %1283 = vmatprep.mubr.bf16.mxu0 %v1879_v15 }
 0x280   : > { %1284 = vmatmul.mubr.bf16.gmra.mxu0 %v1884_v16 }
 0x281   : > { %1287 = vmatprep.mubr.bf16.mxu0 %v1887_v17 }
 0x288   : > { %1288 = vmatmul.mubr.bf16.gmra.mxu0 %v1892_v18 }
 0x289   : > { %1291 = vmatprep.mubr.bf16.mxu0 %v1895_v19 }
 0x290   : > { %1292 = vmatmul.mubr.bf16.gmra.mxu0 %v1900_v20  ;;  %v1135_v20 = vld [vmem:[%s1979_s5] ss:$0 sm:$0xff] }
 0x338   : > { %v1281_v49 = vpop.f32.mrf.mxu0 }
 0x339   : > { %v835_v32 = vadd.f32 %v1281_v49, %v1135_v20 }
 0x33a   : > { %v826_v14 = vpop.f32.mrf.mxu0 }
 0x33b   : > { %v891_v36 = vmax.f32 %v835_v32, 0.0  ;;  %v827_v37 = vadd.f32 %v1135_v20, %v826_v14 }
 0x33c   : > { %v1282_v50 = vpop.f32.mrf.mxu0 }
 0x33d   : > { %v838_v29 = vadd.f32 %v1282_v50, %v1135_v20  ;;  %v889_v40 = vmax.f32 %v827_v37, 0.0 }
 0x33e   : > { %v829_v15 = vpop.f32.mrf.mxu0 }
 0x33f   : > { %v892_v34 = vmax.f32 %v838_v29, 0.0  ;;  %v830_v35 = vadd.f32 %v1135_v20, %v829_v15 }
 0x340   : > { %v1285_v51 = vpop.f32.mrf.mxu0 }
 0x341   : > { %v851_v21 = vadd.f32 %v1285_v51, %v1135_v20  ;;  %v907_v38 = vpack.c.bf16 %v892_v34, %v891_v36  ;;  %v890_v39 = vmax.f32 %v830_v35, 0.0 }
 0x342   : > { %v842_v16 = vpop.f32.mrf.mxu0 }
 0x343   : > { %v895_v27 = vmax.f32 %v851_v21, 0.0  ;;  %v843_v28 = vadd.f32 %v1135_v20, %v842_v16  ;;  %v906_v41 = vpack.c.bf16 %v890_v39, %v889_v40 }
 0x344   : > { %v1286_v52 = vpop.f32.mrf.mxu0 }
 0x345   : > { %v854_v11 = vadd.f32 %v1286_v52, %v1135_v20  ;;  %v893_v33 = vmax.f32 %v843_v28, 0.0 }
 0x346   : > { %v845_v17 = vpop.f32.mrf.mxu0 }
 0x347   : > { %v896_v23 = vmax.f32 %v854_v11, 0.0  ;;  %v846_v24 = vadd.f32 %v1135_v20, %v845_v17 }
 0x348   : > { %v1289_v53 = vpop.f32.mrf.mxu0 }
 0x349   : > { %v867_v4 = vadd.f32 %v1289_v53, %v1135_v20  ;;  %v909_v30 = vpack.c.bf16 %v896_v23, %v895_v27  ;;  %v894_v31 = vmax.f32 %v846_v24, 0.0 }
 0x34a   : > { %v858_v18 = vpop.f32.mrf.mxu0 }
 0x34b   : > { %v899_v9 = vmax.f32 %v867_v4, 0.0  ;;  %v859_v10 = vadd.f32 %v1135_v20, %v858_v18  ;;  %v908_v26 = vpack.c.bf16 %v894_v31, %v893_v33 }
 0x34c   : > { %v1290_v54 = vpop.f32.mrf.mxu0 }
 0x34d   : > { %v870_v1 = vadd.f32 %v1290_v54, %v1135_v20  ;;  %v897_v22 = vmax.f32 %v859_v10, 0.0 }
 0x34e   : > { %v861_v19 = vpop.f32.mrf.mxu0 }
 0x34f   : > { %v900_v6 = vmax.f32 %v870_v1, 0.0  ;;  %v862_v7 = vadd.f32 %v1135_v20, %v861_v19 }
 0x350   : > { %v1293_v55 = vpop.f32.mrf.mxu0 }
 0x351   : > { %v883_v57 = vadd.f32 %v1293_v55, %v1135_v20  ;;  %v911_v12 = vpack.c.bf16 %v900_v6, %v899_v9  ;;  %v898_v13 = vmax.f32 %v862_v7, 0.0 }
 0x352   : > { %v874_v56 = vpop.f32.mrf.mxu0 }
 0x353   : > { %v903_v61 = vmax.f32 %v883_v57, 0.0  ;;  %v875_v62 = vadd.f32 %v1135_v20, %v874_v56  ;;  %v910_v25 = vpack.c.bf16 %v898_v13, %v897_v22 }
 0x354   : > { %v1294_v58 = vpop.f32.mrf.mxu0 }
 0x355   : > { %v886_v59 = vadd.f32 %v1294_v58, %v1135_v20  ;;  %v901_v5 = vmax.f32 %v875_v62, 0.0 }
 0x356   : > { %v877_v60 = vpop.f32.mrf.mxu0 }
 0x357   : > { %v904_v63 = vmax.f32 %v886_v59, 0.0  ;;  %v878_v0 = vadd.f32 %v1135_v20, %v877_v60 }
 0x359   : > { %v913_v2 = vpack.c.bf16 %v904_v63, %v903_v61  ;;  %v902_v3 = vmax.f32 %v878_v0, 0.0 }
 0x35b   : > { %1296 = vmatpush3.bf16.msra.mxu1 %v913_v2  ;;  %v912_v8 = vpack.c.bf16 %v902_v3, %v901_v5 }
 0x35c   : > { %1297 = vmatprep.subr.bf16.mxu1 %v1600_v48 }
 0x35f   : > { %1298 = vmatpush3.bf16.msra.mxu1 %v912_v8 }
 0x360   : > { %1299 = vmatprep.subr.bf16.mxu1 %v1600_v48 }
 0x363   : > { %1300 = vmatpush3.bf16.msra.mxu1 %v911_v12 }
 0x364   : > { %1301 = vmatprep.subr.bf16.mxu1 %v1600_v48 }
 0x367   : > { %1302 = vmatpush3.bf16.msra.mxu1 %v910_v25 }
 0x368   : > { %1303 = vmatprep.subr.bf16.mxu1 %v1600_v48 }
 0x36b   : > { %1304 = vmatpush3.bf16.msra.mxu1 %v909_v30 }
 0x36c   : > { %1305 = vmatprep.subr.bf16.mxu1 %v1600_v48 }
 0x36f   : > { %1306 = vmatpush3.bf16.msra.mxu1 %v908_v26 }
 0x370   : > { %1307 = vmatprep.subr.bf16.mxu1 %v1600_v48 }
 0x373   : > { %1308 = vmatpush3.bf16.msra.mxu1 %v907_v38 }
 0x374   : > { %1309 = vmatprep.subr.bf16.mxu1 %v1600_v48 }
 0x377   : > { %1310 = vmatpush3.bf16.msra.mxu1 %v906_v41 }
 0x37a   : > { %1312 = vmatmul.mubr.bf16.vlgmr.msra.gmra.mxu1 %v905_v42 }
 0x43a   : > { %v948_v43 = vpop.f32.mrf.mxu1 }
 0x43b   : > { %954 = vst [vmem:[%s358_s1] sm:$0xff] %v948_v43 }
 0x43c   : > { %v1313_v44 = vpop.f32.mrf.mxu1 }
 0x43d   : > { %1533 = shalt.err (!%p1530_p5)
}
 0x43e   : > { %s1534_s8 = scalar_lea.hbm %s1933_s13, 128  ;;  %s1538_s27 = scalar_lea.hbm %s1980_s6, 256 }
 0x43f   : > { %p1535_p9 = scmp.ne.s32.totalorder %s1933_s13, %s1534_s8  ;;  %p1539_p8 = scmp.lt.s32.totalorder %s1933_s13, %s1980_s6 }
 0x440   : > { %p1540_p6 = scmp.lt.s32.totalorder %s1538_s27, %s1534_s8 }
 0x441   : > { %p1536_p10 = pnand %p1535_p9, %p2019_p13 }
 0x442   : > { %p1541_p4 = por %p1540_p6, %p1539_p8 }
 0x443   : > { %p1537_p11 = pneg %p1536_p10 }
 0x445   : > { %p1542_p3 = pnand %p1541_p4, %p1537_p11 }
 0x447   : > { %1545 = shalt.err (!%p1542_p3)
}
 0x448   : > { %1325 = dma.vmem_to_hbm [thread:$0]  (%p2019_p13), %s1928_s28, 128, %s1933_s13, %s956_s18   ;;  %v951_v45 = vpop.f32.mrf.mxu1 }
 0x44a   : > { %v1314_v46 = vpop.f32.mrf.mxu1 }
 0x44b PF: > { %s2020_s26 = sld [smem:[#allocation18_spill]]  ;;  %s981_s7 = sand.u32 1, %s1580_s21  }
 0x44c   : > { %p2022_p12 = scmp.ge.s32.totalorder %s1592_s24, 2  ;;  %s982_s11 = scalar_lea.sflag [#allocation4], %s981_s7 }
 0x451   : > { %p2021_p1 = scmp.ne.s32.totalorder %s2020_s26, 0 }
 0x453   : > { %p1342_p2 = pnand %p2022_p12, %p2021_p1 }
 0x455   : > { %p1343_p7 = pneg %p1342_p2 }
 0x457   : > { %1575 = dma.done.wait (%p1343_p7), %s982_s11, 128  }
 0x458   : > { %1577 = vsyncadd (%p1343_p7), %s982_s11, 4294967168  ;;  %s2023_s24 = sld [smem:[#allocation16_spill]]  ;;  %s2026_s21 = smov %s1584_s22 }
 0x459   : > { %s2024_s12 = sld [smem:[#allocation15_spill]] }
 0x45a   : > { %s2025_s23 = sld [smem:[#allocation17_spill]] }
 0x45e   : > { %p23_p13 = scmp.ge.s32.totalorder %s2023_s24, 4  }
 0x45f   : > { %s2027_s22 = smov %s2024_s12 }
 0x460   :  { %25 = sbr.rel (!%p23_p13) target bundleno = 11 (0xb), region = 117 }
 0x465   :  { %987 = vsyncpa [#allocation3], 1 }
 0x466   :  { %989 = vsyncpa [#allocation3 + $0x1], 1 }
 0x467   :  { %990 = vsyncpa [#allocation6], 1 }
 0x468   :  { %992 = vsyncpa [#allocation6 + $0x1], 1 }
 0x469   :  { %993 = vsyncpa [#allocation9], 1 }
 0x46a   :  { %994 = vsyncpa [#allocation4], 1 }
 0x46b   :  { %996 = vsyncpa [#allocation4 + $0x1], 1 }

</bundles_post_ra>
